<compile_context>
chip_gen: v7x
topology: tpu7x:2x2x1
jax: 0.10.0
libtpu: 0.0.40
codegen_flags: <defaults>
</compile_context>

<pallas_src>
import functools

import jax
import jax.numpy as jnp
from jax.experimental import pallas as pl
from jax.experimental.pallas import tpu as pltpu

_PAIRWISE_EPS = 1e-6  # torch.nn.functional.pairwise_distance default eps


def _contrastive_kernel(x0_ref, x1_ref, lbl_ref, out_ref, *, margin, total_b,
                        block_b, blocks_per_partial, needs_mask,
                        lane_dense_label):
    c = pl.program_id(0)   # partial / core index          ("parallel")
    i = pl.program_id(1)   # block index within a partial  ("arbitrary")

    # Init the resident per-partial accumulator (the output block itself).
    @pl.when(i == 0)
    def _():
        out_ref[...] = jnp.zeros_like(out_ref)

    # Inputs stream in native dtype; cast to f32 on the VPU (hidden under DMA).
    x0 = x0_ref[...].astype(jnp.float32)                    # (block_b, D)
    x1 = x1_ref[...].astype(jnp.float32)
    diff = x0 - x1 + _PAIRWISE_EPS
    sq_sum = jnp.sum(diff * diff, axis=-1, keepdims=True)   # (block_b, 1)
    ed = jnp.sqrt(sq_sum)                                    # pairwise distance

    if lane_dense_label:
        lbl = jnp.transpose(lbl_ref[...])                    # (1,bb) -> (bb,1), XLU
    else:
        lbl = lbl_ref[...]                                    # (block_b, 1)

    # Match torch exactly: pow(d, 2) squares the sqrt'ed distance.
    pos = (1.0 - lbl) * (ed * ed)
    neg = lbl * jnp.square(jnp.maximum(margin - ed, 0.0))
    per_sample = pos + neg                                    # (block_b, 1)

    if needs_mask:
        g = c * blocks_per_partial + i                        # global block id
        row = g * block_b + jax.lax.broadcasted_iota(jnp.int32, (block_b, 1), 0)
        per_sample = jnp.where(row < total_b, per_sample, 0.0)

    # (1, 1) tile sum, broadcast-accumulated into the (1, 8, 128) output block.
    out_ref[...] += jnp.sum(per_sample, keepdims=True)


def _vmem_capacity_bytes():
    try:
        return int(pltpu.get_tpu_info().vmem_capacity_bytes)
    except Exception:
        return 64 * 1024 * 1024  # conservative fallback (v7x per-core VMEM)


def _choose_block_b(B, D, itemsize, block_b, budget):
    if block_b is None:
        # 2 inputs x 2 pipeline buffers per row (+ worst-case label padding).
        per_row = 4 * D * itemsize + 1024
        block_b = max(budget // per_row, 8)
    block_b = int(block_b)
    if block_b >= B:
        return B   # a block equal to the full batch dim is always layout-legal
    if block_b >= 128:
        return (block_b // 128) * 128  # lane-aligned -> lane-dense label legal
    return max(8, (block_b // 8) * 8)


def contrastive_loss(output0, output1, label, margin=2.0, block_b=None,
                     num_partials=None):
    """Pallas TPU implementation of ContrastiveLoss.forward."""
    assert output0.shape == output1.shape and output0.ndim == 2
    B, D = output0.shape
    itemsize = jnp.dtype(output0.dtype).itemsize

    vmem_cap = _vmem_capacity_bytes()
    block_b = _choose_block_b(B, D, itemsize, block_b, vmem_cap // 2)
    num_blocks = pl.cdiv(B, block_b)

    if num_partials is None:
        # Leading "parallel" axis: sharded across TensorCores on multi-core
        # parts (v7x / megacore); on single-core chips it simply iterates.
        # Skip it when it would only add a wasted (masked) padding block to a
        # small problem.
        num_partials = 2 if (num_blocks >= 2 and
                             (num_blocks % 2 == 0 or num_blocks >= 6)) else 1
    num_partials = max(1, min(int(num_partials), num_blocks))
    blocks_per_partial = pl.cdiv(num_blocks, num_partials)
    needs_mask = (num_partials * blocks_per_partial * block_b) != B

    # Lane-dense (1, block_b) label blocks are layout-legal only when block_b
    # is a multiple of 128 or covers the whole batch.
    lane_dense = (block_b == B) or (block_b % 128 == 0)

    # Working set: 2 inputs x 2 pipeline buffers + (worst-case lane-padded)
    # label buffers + the small output block.  Cap the scoped VMEM limit well
    # below physical VMEM (v7x only has 64 MiB per TensorCore).
    ws = 4 * block_b * D * itemsize + 2 * block_b * 512 + 2 * 8 * 128 * 4
    vmem_limit = min(int(0.72 * vmem_cap), max(32 << 20, ws + (8 << 20)))
    if ws + (4 << 20) > int(0.75 * vmem_cap):
        # TODO(synk): add an inner "arbitrary" grid axis over D (accumulating
        # the per-row sum of squares) for very wide embeddings.
        raise NotImplementedError(
            f"feature dim D={D} is too wide for a single VMEM tile")

    def data_map(c, i):
        # Clamp so padding (duplicate) blocks never DMA out of bounds; their
        # rows are masked out of the sum inside the kernel.
        return (jnp.minimum(c * blocks_per_partial + i, num_blocks - 1), 0)

    def _run(lane_dense_label):
        if lane_dense_label:
            lbl = label.reshape(1, B).astype(jnp.float32)
            lbl_spec = pl.BlockSpec(
                (1, block_b),
                lambda c, i: (0, jnp.minimum(c * blocks_per_partial + i,
                                             num_blocks - 1)))
        else:
            lbl = label.reshape(B, 1).astype(jnp.float32)
            lbl_spec = pl.BlockSpec((block_b, 1), data_map)

        kernel = functools.partial(
            _contrastive_kernel, margin=float(margin), total_b=B,
            block_b=block_b, blocks_per_partial=blocks_per_partial,
            needs_mask=needs_mask, lane_dense_label=lane_dense_label)

        return pl.pallas_call(
            kernel,
            out_shape=jax.ShapeDtypeStruct((num_partials, 8, 128), jnp.float32),
            grid_spec=pltpu.PrefetchScalarGridSpec(
                num_scalar_prefetch=0,
                grid=(num_partials, blocks_per_partial),
                in_specs=[
                    pl.BlockSpec((block_b, D), data_map),
                    pl.BlockSpec((block_b, D), data_map),
                    lbl_spec,
                ],
                # One resident output block per partial: accumulated in place.
                out_specs=pl.BlockSpec((1, 8, 128), lambda c, i: (c, 0, 0)),
            ),
            compiler_params=pltpu.CompilerParams(
                dimension_semantics=("parallel", "arbitrary"),
                vmem_limit_bytes=int(vmem_limit),
            ),
        )(output0, output1, lbl)

    # NOTE: the lowering fallback below only triggers when called eagerly
    # (under an enclosing jit, Mosaic lowering is deferred past this scope).
    try:
        partials = _run(lane_dense)
    except Exception:
        if not lane_dense:
            raise
        partials = _run(False)  # column-label fallback (padded, always lowers)

    return jnp.sum(partials[:, 0, 0]) / B


if __name__ == "__main__":
    key = jax.random.PRNGKey(0)
    k0, k1, k2 = jax.random.split(key, 3)
    B, D = 20, 32
    margin = 2.0
    output0 = jax.random.normal(k0, (B, D), dtype=jnp.float32)
    output1 = jax.random.normal(k1, (B, D), dtype=jnp.float32)
    label = (jax.random.uniform(k2, (B,)) > 0.5).astype(jnp.float32)  # 0=similar, 1=dissimilar

    def ref_loss(x0, x1, lbl):
        x0 = x0.astype(jnp.float32)
        x1 = x1.astype(jnp.float32)
        d = jnp.sqrt(jnp.sum((x0 - x1 + _PAIRWISE_EPS) ** 2, axis=-1))
        return jnp.mean((1.0 - lbl) * d ** 2
                        + lbl * jnp.maximum(margin - d, 0.0) ** 2)

    ref = ref_loss(output0, output1, label)

    # 1) Default sizing: single full-batch block, lane-dense label path.
    loss = contrastive_loss(output0, output1, label, margin=margin)
    jax.block_until_ready(loss)
    assert jnp.allclose(loss, ref, rtol=1e-5, atol=1e-5), (loss, ref)

    # 2) Tiled + two-partial path: exercises tail masking, padding-block
    #    clamping and the per-partial resident output accumulation.
    loss_tiled = contrastive_loss(output0, output1, label, margin=margin,
                                  block_b=8, num_partials=2)
    jax.block_until_ready(loss_tiled)
    assert jnp.allclose(loss_tiled, ref, rtol=1e-5, atol=1e-5), (loss_tiled, ref)

    # 3) bf16 inputs streamed through HBM, cast to f32 in-kernel.
    x0_bf = output0.astype(jnp.bfloat16)
    x1_bf = output1.astype(jnp.bfloat16)
    ref_bf = ref_loss(x0_bf, x1_bf, label)
    loss_bf = contrastive_loss(x0_bf, x1_bf, label, margin=margin)
    jax.block_until_ready(loss_bf)
    assert jnp.allclose(loss_bf, ref_bf, rtol=1e-5, atol=1e-5), (loss_bf, ref_bf)

    print("KERNEL_OK")
</pallas_src>

<mosaic_0001>
module attributes {stable_mosaic.version = 11 : i64} {
  func.func @_contrastive_kernel(%arg0: i32, %arg1: i32, %arg2: memref<20x32xf32, #tpu.memory_space<vmem>>, %arg3: memref<20x32xf32, #tpu.memory_space<vmem>>, %arg4: memref<1x20xf32, #tpu.memory_space<vmem>>, %arg5: memref<1x8x128xf32, #tpu.memory_space<vmem>>) attributes {dimension_semantics = [#tpu.dimension_semantics<parallel>, #tpu.dimension_semantics<arbitrary>], iteration_bounds = array<i64: 1, 1>, scalar_prefetch = 0 : i64, scratch_operands = 0 : i64, tpu.core_type = #tpu.core_type<tc>, window_params = [{transform_indices = @transform_0, window_bounds = array<i64: 20, 32>}, {transform_indices = @transform_1, window_bounds = array<i64: 20, 32>}, {transform_indices = @transform_2, window_bounds = array<i64: 1, 20>}, {transform_indices = @transform_3, window_bounds = array<i64: 1, 8, 128>}]} {
    %c0_i32 = arith.constant 0 : i32
    %0 = arith.cmpi eq, %arg1, %c0_i32 : i32
    %1 = arith.extui %0 : i1 to i32
    %c0_i32_0 = arith.constant 0 : i32
    %2 = arith.cmpi ne, %1, %c0_i32_0 : i32
    scf.if %2 {
      %cst_17 = arith.constant 0.000000e+00 : f32
      %35 = vector.broadcast %cst_17 : f32 to vector<1x8x128xf32>
      %c0_18 = arith.constant 0 : index
      %c0_19 = arith.constant 0 : index
      %c0_20 = arith.constant 0 : index
      %36 = vector.load %arg5[%c0_18, %c0_19, %c0_20] : memref<1x8x128xf32, #tpu.memory_space<vmem>>, vector<1x8x128xf32>
      tpu.vector_store %arg5[%c0_18, %c0_19, %c0_20], %35 {strides = array<i32>} : memref<1x8x128xf32, #tpu.memory_space<vmem>>, vector<1x8x128xf32>,
    } else {
    }
    %c0 = arith.constant 0 : index
    %c0_1 = arith.constant 0 : index
    %3 = vector.load %arg2[%c0, %c0_1] : memref<20x32xf32, #tpu.memory_space<vmem>>, vector<20x32xf32>
    %c0_2 = arith.constant 0 : index
    %c0_3 = arith.constant 0 : index
    %4 = vector.load %arg3[%c0_2, %c0_3] : memref<20x32xf32, #tpu.memory_space<vmem>>, vector<20x32xf32>
    %5 = arith.subf %3, %4 : vector<20x32xf32>
    %cst = arith.constant 9.99999997E-7 : f32
    %6 = vector.broadcast %cst : f32 to vector<20x32xf32>
    %7 = arith.addf %5, %6 : vector<20x32xf32>
    %8 = arith.mulf %7, %7 : vector<20x32xf32>
    %cst_4 = arith.constant dense<0.000000e+00> : vector<20xf32>
    %9 = vector.multi_reduction <add>, %8, %cst_4 [1] : vector<20x32xf32> to vector<20xf32>
    %10 = vector.shape_cast %9 : vector<20xf32> to vector<20x1xf32>
    %11 = math.sqrt %10 : vector<20x1xf32>
    %c0_5 = arith.constant 0 : index
    %c0_6 = arith.constant 0 : index
    %12 = vector.load %arg4[%c0_5, %c0_6] : memref<1x20xf32, #tpu.memory_space<vmem>>, vector<1x20xf32>
    %13 = tpu.transpose %12, [1, 0] : vector<1x20xf32> -> vector<20x1xf32>
    %cst_7 = arith.constant 1.000000e+00 : f32
    %14 = vector.broadcast %cst_7 : f32 to vector<20x1xf32>
    %15 = arith.subf %14, %13 : vector<20x1xf32>
    %16 = arith.mulf %11, %11 : vector<20x1xf32>
    %17 = arith.mulf %15, %16 : vector<20x1xf32>
    %cst_8 = arith.constant 2.000000e+00 : f32
    %18 = vector.broadcast %cst_8 : f32 to vector<20x1xf32>
    %19 = arith.subf %18, %11 : vector<20x1xf32>
    %cst_9 = arith.constant 0.000000e+00 : f32
    %20 = vector.broadcast %cst_9 : f32 to vector<20x1xf32>
    %21 = arith.maximumf %19, %20 : vector<20x1xf32>
    %22 = arith.mulf %21, %21 : vector<20x1xf32>
    %23 = arith.mulf %13, %22 : vector<20x1xf32>
    %24 = arith.addf %17, %23 : vector<20x1xf32>
    %c0_10 = arith.constant 0 : index
    %c0_11 = arith.constant 0 : index
    %c0_12 = arith.constant 0 : index
    %25 = vector.load %arg5[%c0_10, %c0_11, %c0_12] : memref<1x8x128xf32, #tpu.memory_space<vmem>>, vector<1x8x128xf32>
    %26 = vector.shape_cast %24 : vector<20x1xf32> to vector<1x20x1xf32>
    %cst_13 = arith.constant dense<0.000000e+00> : vector<1xf32>
    %27 = vector.multi_reduction <add>, %26, %cst_13 [1, 2] : vector<1x20x1xf32> to vector<1xf32>
    %28 = vector.shape_cast %27 : vector<1xf32> to vector<1x1x1xf32>
    %29 = vector.extract %28[0, 0, 0] : f32 from vector<1x1x1xf32>
    %30 = vector.broadcast %29 : f32 to vector<1x1xf32>
    %31 = vector.shape_cast %30 : vector<1x1xf32> to vector<1x1x1xf32>
    %32 = vector.broadcast %31 : vector<1x1x1xf32> to vector<1x8x128xf32>
    %33 = arith.addf %25, %32 : vector<1x8x128xf32>
    %c0_14 = arith.constant 0 : index
    %c0_15 = arith.constant 0 : index
    %c0_16 = arith.constant 0 : index
    %34 = vector.load %arg5[%c0_14, %c0_15, %c0_16] : memref<1x8x128xf32, #tpu.memory_space<vmem>>, vector<1x8x128xf32>
    tpu.vector_store %arg5[%c0_14, %c0_15, %c0_16], %33 {strides = array<i32>} : memref<1x8x128xf32, #tpu.memory_space<vmem>>, vector<1x8x128xf32>,
    return
  }
  func.func @transform_0(%arg0: i32, %arg1: i32) -> (i32, i32) {
    %c1_i32 = arith.constant 1 : i32
    %0 = arith.muli %arg0, %c1_i32 : i32
    %1 = arith.addi %0, %arg1 : i32
    %c0_i32 = arith.constant 0 : i32
    %2 = arith.minsi %1, %c0_i32 : i32
    %c0_i32_0 = arith.constant 0 : i32
    %c0_i32_1 = arith.constant 0 : i32
    return %2, %c0_i32_0 : i32, i32
  }
  func.func @transform_1(%arg0: i32, %arg1: i32) -> (i32, i32) {
    %c1_i32 = arith.constant 1 : i32
    %0 = arith.muli %arg0, %c1_i32 : i32
    %1 = arith.addi %0, %arg1 : i32
    %c0_i32 = arith.constant 0 : i32
    %2 = arith.minsi %1, %c0_i32 : i32
    %c0_i32_0 = arith.constant 0 : i32
    %c0_i32_1 = arith.constant 0 : i32
    return %2, %c0_i32_0 : i32, i32
  }
  func.func @transform_2(%arg0: i32, %arg1: i32) -> (i32, i32) {
    %c1_i32 = arith.constant 1 : i32
    %0 = arith.muli %arg0, %c1_i32 : i32
    %1 = arith.addi %0, %arg1 : i32
    %c0_i32 = arith.constant 0 : i32
    %2 = arith.minsi %1, %c0_i32 : i32
    %c0_i32_0 = arith.constant 0 : i32
    %c0_i32_1 = arith.constant 0 : i32
    return %c0_i32_0, %2 : i32, i32
  }
  func.func @transform_3(%arg0: i32, %arg1: i32) -> (i32, i32, i32) {
    %c0_i32 = arith.constant 0 : i32
    %c0_i32_0 = arith.constant 0 : i32
    %c0_i32_1 = arith.constant 0 : i32
    return %arg0, %c0_i32, %c0_i32_0 : i32, i32, i32
  }
}

module attributes {stable_mosaic.version = 11 : i64} {
  func.func @_contrastive_kernel(%arg0: i32, %arg1: i32, %arg2: memref<20x32xf32, #tpu.memory_space<vmem>>, %arg3: memref<20x32xf32, #tpu.memory_space<vmem>>, %arg4: memref<20x1xf32, #tpu.memory_space<vmem>>, %arg5: memref<1x8x128xf32, #tpu.memory_space<vmem>>) attributes {dimension_semantics = [#tpu.dimension_semantics<parallel>, #tpu.dimension_semantics<arbitrary>], iteration_bounds = array<i64: 1, 1>, scalar_prefetch = 0 : i64, scratch_operands = 0 : i64, tpu.core_type = #tpu.core_type<tc>, window_params = [{transform_indices = @transform_0, window_bounds = array<i64: 20, 32>}, {transform_indices = @transform_1, window_bounds = array<i64: 20, 32>}, {transform_indices = @transform_2, window_bounds = array<i64: 20, 1>}, {transform_indices = @transform_3, window_bounds = array<i64: 1, 8, 128>}]} {
    %c0_i32 = arith.constant 0 : i32
    %0 = arith.cmpi eq, %arg1, %c0_i32 : i32
    %1 = arith.extui %0 : i1 to i32
    %c0_i32_0 = arith.constant 0 : i32
    %2 = arith.cmpi ne, %1, %c0_i32_0 : i32
    scf.if %2 {
      %cst_17 = arith.constant 0.000000e+00 : f32
      %34 = vector.broadcast %cst_17 : f32 to vector<1x8x128xf32>
      %c0_18 = arith.constant 0 : index
      %c0_19 = arith.constant 0 : index
      %c0_20 = arith.constant 0 : index
      %35 = vector.load %arg5[%c0_18, %c0_19, %c0_20] : memref<1x8x128xf32, #tpu.memory_space<vmem>>, vector<1x8x128xf32>
      tpu.vector_store %arg5[%c0_18, %c0_19, %c0_20], %34 {strides = array<i32>} : memref<1x8x128xf32, #tpu.memory_space<vmem>>, vector<1x8x128xf32>,
    } else {
    }
    %c0 = arith.constant 0 : index
    %c0_1 = arith.constant 0 : index
    %3 = vector.load %arg2[%c0, %c0_1] : memref<20x32xf32, #tpu.memory_space<vmem>>, vector<20x32xf32>
    %c0_2 = arith.constant 0 : index
    %c0_3 = arith.constant 0 : index
    %4 = vector.load %arg3[%c0_2, %c0_3] : memref<20x32xf32, #tpu.memory_space<vmem>>, vector<20x32xf32>
    %5 = arith.subf %3, %4 : vector<20x32xf32>
    %cst = arith.constant 9.99999997E-7 : f32
    %6 = vector.broadcast %cst : f32 to vector<20x32xf32>
    %7 = arith.addf %5, %6 : vector<20x32xf32>
    %8 = arith.mulf %7, %7 : vector<20x32xf32>
    %cst_4 = arith.constant dense<0.000000e+00> : vector<20xf32>
    %9 = vector.multi_reduction <add>, %8, %cst_4 [1] : vector<20x32xf32> to vector<20xf32>
    %10 = vector.shape_cast %9 : vector<20xf32> to vector<20x1xf32>
    %11 = math.sqrt %10 : vector<20x1xf32>
    %c0_5 = arith.constant 0 : index
    %c0_6 = arith.constant 0 : index
    %12 = vector.load %arg4[%c0_5, %c0_6] : memref<20x1xf32, #tpu.memory_space<vmem>>, vector<20x1xf32>
    %cst_7 = arith.constant 1.000000e+00 : f32
    %13 = vector.broadcast %cst_7 : f32 to vector<20x1xf32>
    %14 = arith.subf %13, %12 : vector<20x1xf32>
    %15 = arith.mulf %11, %11 : vector<20x1xf32>
    %16 = arith.mulf %14, %15 : vector<20x1xf32>
    %cst_8 = arith.constant 2.000000e+00 : f32
    %17 = vector.broadcast %cst_8 : f32 to vector<20x1xf32>
    %18 = arith.subf %17, %11 : vector<20x1xf32>
    %cst_9 = arith.constant 0.000000e+00 : f32
    %19 = vector.broadcast %cst_9 : f32 to vector<20x1xf32>
    %20 = arith.maximumf %18, %19 : vector<20x1xf32>
    %21 = arith.mulf %20, %20 : vector<20x1xf32>
    %22 = arith.mulf %12, %21 : vector<20x1xf32>
    %23 = arith.addf %16, %22 : vector<20x1xf32>
    %c0_10 = arith.constant 0 : index
    %c0_11 = arith.constant 0 : index
    %c0_12 = arith.constant 0 : index
    %24 = vector.load %arg5[%c0_10, %c0_11, %c0_12] : memref<1x8x128xf32, #tpu.memory_space<vmem>>, vector<1x8x128xf32>
    %25 = vector.shape_cast %23 : vector<20x1xf32> to vector<1x20x1xf32>
    %cst_13 = arith.constant dense<0.000000e+00> : vector<1xf32>
    %26 = vector.multi_reduction <add>, %25, %cst_13 [1, 2] : vector<1x20x1xf32> to vector<1xf32>
    %27 = vector.shape_cast %26 : vector<1xf32> to vector<1x1x1xf32>
    %28 = vector.extract %27[0, 0, 0] : f32 from vector<1x1x1xf32>
    %29 = vector.broadcast %28 : f32 to vector<1x1xf32>
    %30 = vector.shape_cast %29 : vector<1x1xf32> to vector<1x1x1xf32>
    %31 = vector.broadcast %30 : vector<1x1x1xf32> to vector<1x8x128xf32>
    %32 = arith.addf %24, %31 : vector<1x8x128xf32>
    %c0_14 = arith.constant 0 : index
    %c0_15 = arith.constant 0 : index
    %c0_16 = arith.constant 0 : index
    %33 = vector.load %arg5[%c0_14, %c0_15, %c0_16] : memref<1x8x128xf32, #tpu.memory_space<vmem>>, vector<1x8x128xf32>
    tpu.vector_store %arg5[%c0_14, %c0_15, %c0_16], %32 {strides = array<i32>} : memref<1x8x128xf32, #tpu.memory_space<vmem>>, vector<1x8x128xf32>,
    return
  }
  func.func @transform_0(%arg0: i32, %arg1: i32) -> (i32, i32) {
    %c1_i32 = arith.constant 1 : i32
    %0 = arith.muli %arg0, %c1_i32 : i32
    %1 = arith.addi %0, %arg1 : i32
    %c0_i32 = arith.constant 0 : i32
    %2 = arith.minsi %1, %c0_i32 : i32
    %c0_i32_0 = arith.constant 0 : i32
    %c0_i32_1 = arith.constant 0 : i32
    return %2, %c0_i32_0 : i32, i32
  }
  func.func @transform_1(%arg0: i32, %arg1: i32) -> (i32, i32) {
    %c1_i32 = arith.constant 1 : i32
    %0 = arith.muli %arg0, %c1_i32 : i32
    %1 = arith.addi %0, %arg1 : i32
    %c0_i32 = arith.constant 0 : i32
    %2 = arith.minsi %1, %c0_i32 : i32
    %c0_i32_0 = arith.constant 0 : i32
    %c0_i32_1 = arith.constant 0 : i32
    return %2, %c0_i32_0 : i32, i32
  }
  func.func @transform_2(%arg0: i32, %arg1: i32) -> (i32, i32) {
    %c1_i32 = arith.constant 1 : i32
    %0 = arith.muli %arg0, %c1_i32 : i32
    %1 = arith.addi %0, %arg1 : i32
    %c0_i32 = arith.constant 0 : i32
    %2 = arith.minsi %1, %c0_i32 : i32
    %c0_i32_0 = arith.constant 0 : i32
    %c0_i32_1 = arith.constant 0 : i32
    return %2, %c0_i32_0 : i32, i32
  }
  func.func @transform_3(%arg0: i32, %arg1: i32) -> (i32, i32, i32) {
    %c0_i32 = arith.constant 0 : i32
    %c0_i32_0 = arith.constant 0 : i32
    %c0_i32_1 = arith.constant 0 : i32
    return %arg0, %c0_i32, %c0_i32_0 : i32, i32, i32
  }
}

</mosaic_0001>

<bundles_post_ra>
// kernel: tpu_custom_call.1
= control target key start
LH: loop header
LB: loop body
LE: loop exit
PB: predicated region body
PF: predicated region fallthrough
CT: control target
= control target key end

     0   :  { %8 = vsyncpa [#allocation3], 0  ;;  %s389_s0 = inlined_call_operand.hbm [shape: f32[20,32], index: 0, kind: input, shape index: {}]   ;;  %s390_s1 = inlined_call_operand.hbm [shape: f32[20,32], index: 1, kind: input, shape index: {}]   ;;  %s391_s2 = inlined_call_operand.vmem [shape: f32[1,20], index: 2, kind: input, shape index: {}]   ;;  %s392_s3 = inlined_call_operand.hbm [shape: f32[1,8,128], index: 3, kind: output, shape index: {}]  }
   0x1   :  { %9 = vsyncpa [#allocation6], 0 }
   0x2   :  { %10 = vsyncpa [#allocation4], 0  ;;  %s325_s12 = smov [#allocation2]   ;;  %s253_s16 = scalar_lea.hbm %s389_s0, 384 }
   0x3   :  { %s22_s13 = sshll.u32 %s325_s12, 4  ;;  %p254_p0 = scmp.ne.s32.totalorder %s389_s0, %s253_s16  ;;  %s23_s13 = int_to_ptr.vmem [resolvable:$true] %s22_s13 }
   0x4   :  { %p257_p1 = scmp.lt.u32.totalorder %s253_s16, %s389_s0 }
   0x6   :  { %p259_p2 = pnand %p257_p1, %p254_p0 }
   0x8   :  { %262 = shalt.err (!%p259_p2)
}
   0x9   :  { %s263_s21 = scalar_lea.vmem %s23_s13, 384  ;;  %p268_p4 = scmp.lt.s32.totalorder %s23_s13, %s23_s13 }
   0xa   :  { %p264_p3 = scmp.ne.s32.totalorder %s23_s13, %s263_s21  ;;  %p269_p5 = scmp.lt.s32.totalorder %s263_s21, %s263_s21 }
   0xc   :  { %p270_p6 = por %p269_p5, %p268_p4 }
   0xe   :  { %p271_p7 = pnand %p270_p6, %p264_p3 }
  0x10   :  { %274 = shalt.err (!%p271_p7)
}
  0x11   :  { %s326_s22 = smov 128   ;;  %s327_s23 = smov 8  }
  0x12   :  { %28 = dma.hbm_to_vmem [thread:$0]  %s389_s0, 384, %s23_s13, [#allocation3], %s326_s22, %s326_s22, %s327_s23  }
  0x13   :  { %s328_s26 = smov [#allocation5]   ;;  %s275_s30 = scalar_lea.hbm %s390_s1, 384 }
  0x14   :  { %s40_s27 = sshll.u32 %s328_s26, 4  ;;  %p276_p8 = scmp.ne.s32.totalorder %s390_s1, %s275_s30  ;;  %s41_s27 = int_to_ptr.vmem [resolvable:$true] %s40_s27 }
  0x15   :  { %p279_p9 = scmp.lt.u32.totalorder %s275_s30, %s390_s1 }
  0x17   :  { %p281_p10 = pnand %p279_p9, %p276_p8 }
  0x19   :  { %284 = shalt.err (!%p281_p10)
}
  0x1a   :  { %s285_s8 = scalar_lea.vmem %s41_s27, 384  ;;  %p290_p12 = scmp.lt.s32.totalorder %s41_s27, %s41_s27 }
  0x1b   :  { %p286_p11 = scmp.ne.s32.totalorder %s41_s27, %s285_s8  ;;  %p291_p13 = scmp.lt.s32.totalorder %s285_s8, %s285_s8 }
  0x1d   :  { %p292_p0 = por %p291_p13, %p290_p12 }
  0x1f   :  { %p293_p1 = pnand %p292_p0, %p286_p11 }
  0x21   :  { %296 = shalt.err (!%p293_p1)
}
  0x22   :  { %46 = dma.hbm_to_vmem [thread:$0]  %s390_s1, 384, %s41_s27, [#allocation6], %s326_s22, %s326_s22, %s327_s23  }
  0x23   :  { %319 = dma.done.wait [#allocation3], 384  }
  0x24   :  { %320 = vsyncadd [#allocation3], 4294966912 }
  0x25   :  { %321 = dma.done.wait [#allocation6], 384  }
  0x26   :  { %322 = vsyncadd [#allocation6], 4294966912  ;;  %v94_v0 = vld [vmem:[#allocation2 + $0x10] sm:$0xf]  ;;  %v97_v1 = vld [vmem:[#allocation5 + $0x10] sm:$0xf] }
  0x27   :  { %v92_v2 = vld [vmem:[#allocation2] sm:$0xff]  ;;  %v100_v3 = vsub.f32 %v94_v0, %v97_v1  ;;  %v95_v4 = vld [vmem:[#allocation5] sm:$0xff]  ;;  %v93_v5 = vld [vmem:[#allocation2 + $0x8] sm:$0xff]  ;;  %vm114_vm0 = vcmask 257024   ;;  %vm107_vm1 = vcmask 261120   ;;  %vm197_vm8 = vcmask 7168  }
  0x28   :  { %v96_v6 = vld [vmem:[#allocation5 + $0x8] sm:$0xff]  ;;  %v98_v7 = vsub.f32 %v92_v2, %v95_v4  ;;  %vm201_vm9 = vcmask 3072  }
  0x29   :  { %v99_v8 = vsub.f32 %v93_v5, %v96_v6  ;;  %v103_v9 = vadd.f32 1e-06, %v100_v3  ;;  %v139_v18 = vld [vmem:[%s391_s2] sm:$0x1]  ;;  %s329_s2 = smov [#allocation7]  }
  0x2a   :  { %v101_v10 = vadd.f32 1e-06, %v98_v7  ;;  %s222_s11 = sshll.u32 %s329_s2, 4  ;;  %s223_s11 = int_to_ptr.vmem [resolvable:$true] %s222_s11 }
  0x2b   :  { %v102_v11 = vadd.f32 1e-06, %v99_v8  ;;  %v106_v12 = vmul.f32 %v103_v9, %v103_v9  ;;  %s297_s13 = scalar_lea.vmem %s223_s11, 128  ;;  %p302_p3 = scmp.lt.s32.totalorder %s223_s11, %s223_s11 }
  0x2c   :  { %v104_v13 = vmul.f32 %v101_v10, %v101_v10  ;;  %p298_p2 = scmp.ne.s32.totalorder %s223_s11, %s297_s13  ;;  %p303_p4 = scmp.lt.s32.totalorder %s297_s13, %s297_s13 }
  0x2d   :  { %v105_v14 = vmul.f32 %v102_v11, %v102_v11  ;;  %v115_v15 = vsel %vm114_vm0, %v106_v12, 0.0 }
  0x2e   :  { %116 = vadd.xlane.f32.xlu1 %v115_v15  ;;  %v108_v16 = vsel %vm107_vm1, %v104_v13, 0.0  ;;  %p304_p5 = por %p303_p4, %p302_p3 }
  0x2f   :  { %109 = vadd.xlane.f32.xlu0 %v108_v16  ;;  %v111_v17 = vsel %vm107_vm1, %v105_v14, 0.0 }
  0x30   :  { %p305_p6 = pnand %p304_p5, %p298_p2 }
  0x33   :  { %112 = vadd.xlane.f32.xlu0 %v111_v17 }
  0x61   :  { %140 = vxpose.xlu1.b32.start.end [1/1] (short) (narrow) %v139_v18, 24 }
  0xbb   :  { %v117_v21 = vpop.xlane.xlu1 %116 }
  0xbc   :  { %v110_v19 = vpop.xlane.xlu0 %109  ;;  %vm134_vm6 = vcmp.eq.f32.partialorder %v117_v21, inf  ;;  %v137_v35 = vand.u32 2147483648, %v117_v21  ;;  %vm136_vm7 = vcmp.eq.f32.partialorder %v117_v21, 0.0 }
  0xbd   :  { %247 = vrsqrt.f32 %v110_v19  ;;  %vm120_vm2 = vcmp.eq.f32.partialorder %v110_v19, inf  ;;  %v123_v27 = vand.u32 2147483648, %v110_v19  ;;  %vm122_vm4 = vcmp.eq.f32.partialorder %v110_v19, 0.0 }
  0xc0   :  { %v113_v20 = vpop.xlane.xlu0 %112 }
  0xc1   :  { %249 = vrsqrt.f32 %v113_v20  ;;  %vm127_vm3 = vcmp.eq.f32.partialorder %v113_v20, inf  ;;  %v130_v29 = vand.u32 2147483648, %v113_v20  ;;  %vm129_vm5 = vcmp.eq.f32.partialorder %v113_v20, 0.0 }
  0xc2   :  { %251 = vrsqrt.f32 %v117_v21 }
  0xc7   :  { %v248_v22 = vpop.eup %247 }
  0xc8   :  { %v119_v24 = vmul.f32 %v248_v22, %v110_v19 }
  0xca   :  { %v121_v28 = vsel %vm120_vm2, %v110_v19, %v119_v24 }
  0xcb   :  { %v250_v23 = vpop.eup %249  ;;  %v124_v32 = vsel %vm122_vm4, %v123_v27, %v121_v28 }
  0xcc   :  { %v252_v25 = vpop.eup %251  ;;  %v126_v26 = vmul.f32 %v250_v23, %v113_v20  ;;  %v181_v36 = vsub.f32 2.0, %v124_v32  ;;  %v175_v44 = vmul.f32 %v124_v32, %v124_v32 }
  0xcd   :  { %v133_v30 = vmul.f32 %v252_v25, %v117_v21 }
  0xce   :  { %v128_v31 = vsel %vm127_vm3, %v113_v20, %v126_v26  ;;  %v184_v40 = vmax.f32 %v181_v36, 0.0 }
  0xcf   :  { %v131_v33 = vsel %vm129_vm5, %v130_v29, %v128_v31  ;;  %v135_v34 = vsel %vm134_vm6, %v117_v21, %v133_v30 }
  0xd0   :  { %v182_v37 = vsub.f32 2.0, %v131_v33  ;;  %v138_v38 = vsel %vm136_vm7, %v137_v35, %v135_v34  ;;  %v187_v45 = vmul.f32 %v184_v40, %v184_v40  ;;  %v176_v50 = vmul.f32 %v131_v33, %v131_v33 }
  0xd1   :  { %v183_v41 = vsub.f32 2.0, %v138_v38  ;;  %v177_v55 = vmul.f32 %v138_v38, %v138_v38 }
  0xd2   :  { %v185_v43 = vmax.f32 %v182_v37, 0.0 }
  0xd3   :  { %v186_v47 = vmax.f32 %v183_v41, 0.0 }
  0xd4   :  { %v188_v51 = vmul.f32 %v185_v43, %v185_v43 }
  0xd5   :  { %v189_v59 = vmul.f32 %v186_v47, %v186_v47 }
  0xe1   :  { %v156_v39 = vpop.trf.xlu1 }
  0xe2   :  { %v172_v42 = vsub.f32 1.0, %v156_v39  ;;  %v190_v52 = vmul.f32 %v187_v45, %v156_v39 }
  0xe4   :  { %v178_v48 = vmul.f32 %v175_v44, %v172_v42 }
  0xe5   :  { %v157_v46 = vpop.trf.xlu1 }
  0xe6   :  { %v173_v49 = vsub.f32 1.0, %v157_v46  ;;  %v191_v54 = vmul.f32 %v188_v51, %v157_v46  ;;  %v193_v57 = vadd.f32 %v190_v52, %v178_v48 }
  0xe8   :  { %v179_v53 = vmul.f32 %v176_v50, %v173_v49  ;;  %v198_v1 = vsel %vm197_vm8, %v193_v57, 0.0 }
  0xe9   :  { %v158_v56 = vpop.trf.xlu1 }
  0xea   :  { %v194_v58 = vadd.f32 %v191_v54, %v179_v53  ;;  %v174_v60 = vsub.f32 1.0, %v158_v56  ;;  %v192_v62 = vmul.f32 %v189_v59, %v158_v56 }
  0xec   :  { %v180_v61 = vmul.f32 %v177_v55, %v174_v60  ;;  %v199_v63 = vsel %vm197_vm8, %v194_v58, 0.0 }
  0xed   :  { %v200_v2 = vadd.f32 %v199_v63, %v198_v1 }
  0xee   :  { %v195_v0 = vadd.f32 %v192_v62, %v180_v61 }
  0xf0   :  { %v202_v3 = vsel %vm201_vm9, %v195_v0, 0.0 }
  0xf1   :  { %v203_v4 = vadd.f32 %v202_v3, %v200_v2 }
  0xf3   :  { %204 = vadd.xlane.f32.xlu0 %v203_v4 }
 0x180   :  { %v205_v5 = vpop.xlane.xlu0 %204 }
 0x181   :  { %v206_v6 = vrot.slane %v205_v5, 4 }
 0x183   :  { %v207_v7 = vadd.f32 %v206_v6, %v205_v5 }
 0x185   :  { %v208_v8 = vrot.slane %v207_v7, 2 }
 0x187   :  { %v209_v9 = vadd.f32 %v208_v8, %v207_v7 }
 0x189   :  { %v210_v10 = vrot.slane %v209_v9, 1 }
 0x18b   :  { %v211_v11 = vadd.f32 %v210_v10, %v209_v9 }
 0x18d   :  { %239 = vpush %v211_v11 }
 0x1be   :  { %s240_s12 = spop %239 }
 0x1bf   :  { %v213_v12 = vstv %s240_s12 }
 0x1c0   :  { %215 = vst [vmem:[#allocation7] sm:$0xff] %v213_v12 }
 0x1c1   :  { %308 = shalt.err (!%p305_p6)
}
 0x1c2   :  { %s309_s16 = scalar_lea.hbm %s392_s3, 128 }
 0x1c3   :  { %p310_p7 = scmp.ne.s32.totalorder %s392_s3, %s309_s16  ;;  %p313_p8 = scmp.lt.u32.totalorder %s309_s16, %s392_s3 }
 0x1c5   :  { %p315_p9 = pnand %p313_p8, %p310_p7 }
 0x1c7   :  { %318 = shalt.err (!%p315_p9)
}
 0x1c8   :  { %225 = dma.vmem_to_hbm [thread:$0]  %s223_s11, 128, %s392_s3, [#allocation4]  }
 0x1c9   :  { %323 = dma.done.wait [#allocation4], 128  }
 0x1ca   :  { %324 = vsyncadd [#allocation4], 4294967168 }
 0x1cb   :  { %229 = vsyncpa [#allocation3], 1 }
 0x1cc   :  { %230 = vsyncpa [#allocation6], 1 }
 0x1cd   :  { %231 = vsyncpa [#allocation4], 1 }

// kernel: tpu_custom_call.1
= control target key start
LH: loop header
LB: loop body
LE: loop exit
PB: predicated region body
PF: predicated region fallthrough
CT: control target
= control target key end

     0   :  { %8 = vsyncpa [#allocation3], 0  ;;  %s358_s0 = inlined_call_operand.vmem [shape: f32[20,32], index: 0, kind: input, shape index: {}]   ;;  %s359_s1 = inlined_call_operand.hbm [shape: f32[20,32], index: 1, kind: input, shape index: {}]   ;;  %s360_s2 = inlined_call_operand.vmem [shape: f32[20,1], index: 2, kind: input, shape index: {}]   ;;  %s361_s3 = inlined_call_operand.hbm [shape: f32[1,8,128], index: 3, kind: output, shape index: {}]  }
   0x1   :  { %9 = vsyncpa [#allocation4], 0  ;;  %s292_s12 = smov [#allocation2]   ;;  %s244_s16 = scalar_lea.hbm %s359_s1, 384 }
   0x2   :  { %s35_s13 = sshll.u32 %s292_s12, 4  ;;  %p245_p0 = scmp.ne.s32.totalorder %s359_s1, %s244_s16  ;;  %s36_s13 = int_to_ptr.vmem [resolvable:$true] %s35_s13 }
   0x3   :  { %p248_p1 = scmp.lt.u32.totalorder %s244_s16, %s359_s1 }
   0x5   :  { %p250_p2 = pnand %p248_p1, %p245_p0 }
   0x7   :  { %253 = shalt.err (!%p250_p2)
}
   0x8   :  { %s254_s21 = scalar_lea.vmem %s36_s13, 384  ;;  %p259_p4 = scmp.lt.s32.totalorder %s36_s13, %s36_s13 }
   0x9   :  { %p255_p3 = scmp.ne.s32.totalorder %s36_s13, %s254_s21  ;;  %p260_p5 = scmp.lt.s32.totalorder %s254_s21, %s254_s21 }
   0xb   :  { %p261_p6 = por %p260_p5, %p259_p4 }
   0xd   :  { %p262_p7 = pnand %p261_p6, %p255_p3 }
   0xf   :  { %265 = shalt.err (!%p262_p7)
}
  0x10   :  { %s293_s22 = smov 128   ;;  %s294_s23 = smov 8  }
  0x11   :  { %41 = dma.hbm_to_vmem [thread:$0]  %s359_s1, 384, %s36_s13, [#allocation3], %s293_s22, %s293_s22, %s294_s23  }
  0x12   :  { %288 = dma.done.wait [#allocation3], 384  }
  0x13   :  { %289 = vsyncadd [#allocation3], 4294966912  ;;  %v110_v0 = vld [vmem:[%s358_s0 + $0x10] sm:$0xf]  ;;  %v108_v2 = vld [vmem:[%s358_s0] sm:$0xff]  ;;  %vm130_vm0 = vcmask 257024  }
  0x14   :  { %v113_v1 = vld [vmem:[#allocation2 + $0x10] sm:$0xf]  ;;  %v111_v4 = vld [vmem:[#allocation2] sm:$0xff]  ;;  %v109_v5 = vld [vmem:[%s358_s0 + $0x8] sm:$0xff]  ;;  %vm123_vm1 = vcmask 261120   ;;  %vm183_vm8 = vcmask 7168  }
  0x15   :  { %v116_v3 = vsub.f32 %v110_v0, %v113_v1  ;;  %v112_v6 = vld [vmem:[#allocation2 + $0x8] sm:$0xff]  ;;  %v114_v7 = vsub.f32 %v108_v2, %v111_v4  ;;  %v155_v34 = vld [vmem:[%s360_s2] sm:$0xff]  ;;  %v157_v40 = vld [vmem:[%s360_s2 + $0x10] sm:$0xf]  ;;  %vm187_vm9 = vcmask 3072  }
  0x16   :  { %v115_v8 = vsub.f32 %v109_v5, %v112_v6  ;;  %v156_v39 = vld [vmem:[%s360_s2 + $0x8] sm:$0xff]  ;;  %v158_v43 = vsub.f32 1.0, %v155_v34  ;;  %v160_v49 = vsub.f32 1.0, %v157_v40  ;;  %s295_s2 = smov [#allocation5]  }
  0x17   :  { %v119_v9 = vadd.f32 1e-06, %v116_v3  ;;  %v117_v10 = vadd.f32 1e-06, %v114_v7  ;;  %v159_v48 = vsub.f32 1.0, %v156_v39  ;;  %s208_s9 = sshll.u32 %s295_s2, 4  ;;  %s209_s9 = int_to_ptr.vmem [resolvable:$true] %s208_s9 }
  0x18   :  { %v118_v11 = vadd.f32 1e-06, %v115_v8  ;;  %s266_s11 = scalar_lea.vmem %s209_s9, 128  ;;  %p271_p9 = scmp.lt.s32.totalorder %s209_s9, %s209_s9 }
  0x19   :  { %v122_v12 = vmul.f32 %v119_v9, %v119_v9  ;;  %v120_v13 = vmul.f32 %v117_v10, %v117_v10  ;;  %p267_p8 = scmp.ne.s32.totalorder %s209_s9, %s266_s11  ;;  %p272_p10 = scmp.lt.s32.totalorder %s266_s11, %s266_s11 }
  0x1a   :  { %v121_v14 = vmul.f32 %v118_v11, %v118_v11 }
  0x1b   :  { %v131_v15 = vsel %vm130_vm0, %v122_v12, 0.0  ;;  %v124_v16 = vsel %vm123_vm1, %v120_v13, 0.0  ;;  %p273_p11 = por %p272_p10, %p271_p9 }
  0x1c   :  { %132 = vadd.xlane.f32.xlu1 %v131_v15  ;;  %125 = vadd.xlane.f32.xlu0 %v124_v16  ;;  %v127_v17 = vsel %vm123_vm1, %v121_v14, 0.0 }
  0x1d   :  { %p274_p12 = pnand %p273_p11, %p267_p8 }
  0x20   :  { %128 = vadd.xlane.f32.xlu0 %v127_v17 }
  0xa9   :  { %v133_v18 = vpop.xlane.xlu1 %132  ;;  %v126_v19 = vpop.xlane.xlu0 %125 }
  0xaa   :  { %238 = vrsqrt.f32 %v133_v18  ;;  %vm150_vm2 = vcmp.eq.f32.partialorder %v133_v18, inf  ;;  %v153_v24 = vand.u32 2147483648, %v133_v18  ;;  %vm136_vm3 = vcmp.eq.f32.partialorder %v126_v19, inf }
  0xab   :  { %240 = vrsqrt.f32 %v126_v19  ;;  %v139_v26 = vand.u32 2147483648, %v126_v19  ;;  %vm152_vm4 = vcmp.eq.f32.partialorder %v133_v18, 0.0  ;;  %vm138_vm5 = vcmp.eq.f32.partialorder %v126_v19, 0.0 }
  0xad   :  { %v129_v20 = vpop.xlane.xlu0 %128 }
  0xae   :  { %242 = vrsqrt.f32 %v129_v20  ;;  %vm143_vm6 = vcmp.eq.f32.partialorder %v129_v20, inf  ;;  %v146_v36 = vand.u32 2147483648, %v129_v20  ;;  %vm145_vm7 = vcmp.eq.f32.partialorder %v129_v20, 0.0 }
  0xb4   :  { %v239_v21 = vpop.eup %238 }
  0xb5   :  { %v241_v22 = vpop.eup %240  ;;  %v149_v23 = vmul.f32 %v239_v21, %v133_v18 }
  0xb6   :  { %v135_v25 = vmul.f32 %v241_v22, %v126_v19 }
  0xb7   :  { %v151_v27 = vsel %vm150_vm2, %v133_v18, %v149_v23 }
  0xb8   :  { %v137_v28 = vsel %vm136_vm3, %v126_v19, %v135_v25  ;;  %v154_v29 = vsel %vm152_vm4, %v153_v24, %v151_v27  ;;  %v243_v30 = vpop.eup %242 }
  0xb9   :  { %v140_v31 = vsel %vm138_vm5, %v139_v26, %v137_v28  ;;  %v169_v32 = vsub.f32 2.0, %v154_v29  ;;  %v142_v33 = vmul.f32 %v243_v30, %v129_v20  ;;  %v163_v51 = vmul.f32 %v154_v29, %v154_v29 }
  0xba   :  { %v167_v35 = vsub.f32 2.0, %v140_v31  ;;  %v161_v44 = vmul.f32 %v140_v31, %v140_v31 }
  0xbb   :  { %v172_v37 = vmax.f32 %v169_v32, 0.0  ;;  %v144_v38 = vsel %vm143_vm6, %v129_v20, %v142_v33  ;;  %v166_v58 = vmul.f32 %v163_v51, %v160_v49 }
  0xbc   :  { %v170_v41 = vmax.f32 %v167_v35, 0.0  ;;  %v147_v42 = vsel %vm145_vm7, %v146_v36, %v144_v38  ;;  %v164_v54 = vmul.f32 %v161_v44, %v158_v43 }
  0xbd   :  { %v168_v45 = vsub.f32 2.0, %v147_v42  ;;  %v175_v47 = vmul.f32 %v172_v37, %v172_v37  ;;  %v162_v50 = vmul.f32 %v147_v42, %v147_v42 }
  0xbe   :  { %v173_v46 = vmul.f32 %v170_v41, %v170_v41 }
  0xbf   :  { %v171_v52 = vmax.f32 %v168_v45, 0.0  ;;  %v178_v56 = vmul.f32 %v175_v47, %v157_v40  ;;  %v165_v57 = vmul.f32 %v162_v50, %v159_v48 }
  0xc0   :  { %v176_v53 = vmul.f32 %v173_v46, %v155_v34 }
  0xc1   :  { %v174_v55 = vmul.f32 %v171_v52, %v171_v52  ;;  %v181_v62 = vadd.f32 %v178_v56, %v166_v58 }
  0xc2   :  { %v179_v60 = vadd.f32 %v176_v53, %v164_v54 }
  0xc3   :  { %v177_v59 = vmul.f32 %v174_v55, %v156_v39  ;;  %v188_v2 = vsel %vm187_vm9, %v181_v62, 0.0 }
  0xc4   :  { %v184_v63 = vsel %vm183_vm8, %v179_v60, 0.0 }
  0xc5   :  { %v180_v61 = vadd.f32 %v177_v59, %v165_v57 }
  0xc7   :  { %v185_v0 = vsel %vm183_vm8, %v180_v61, 0.0 }
  0xc8   :  { %v186_v1 = vadd.f32 %v185_v0, %v184_v63 }
  0xca   :  { %v189_v3 = vadd.f32 %v188_v2, %v186_v1 }
  0xcc   :  { %190 = vadd.xlane.f32.xlu1 %v189_v3 }
 0x159   :  { %v191_v4 = vpop.xlane.xlu1 %190 }
 0x15a   :  { %v192_v5 = vrot.slane %v191_v4, 4 }
 0x15c   :  { %v193_v6 = vadd.f32 %v192_v5, %v191_v4 }
 0x15e   :  { %v194_v7 = vrot.slane %v193_v6, 2 }
 0x160   :  { %v195_v8 = vadd.f32 %v194_v7, %v193_v6 }
 0x162   :  { %v196_v9 = vrot.slane %v195_v8, 1 }
 0x164   :  { %v197_v10 = vadd.f32 %v196_v9, %v195_v8 }
 0x166   :  { %231 = vpush %v197_v10 }
 0x197   :  { %s232_s10 = spop %231 }
 0x198   :  { %v199_v11 = vstv %s232_s10 }
 0x199   :  { %201 = vst [vmem:[#allocation5] sm:$0xff] %v199_v11 }
 0x19a   :  { %277 = shalt.err (!%p274_p12)
}
 0x19b   :  { %s278_s14 = scalar_lea.hbm %s361_s3, 128 }
 0x19c   :  { %p279_p13 = scmp.ne.s32.totalorder %s361_s3, %s278_s14  ;;  %p282_p0 = scmp.lt.u32.totalorder %s278_s14, %s361_s3 }
 0x19e   :  { %p284_p1 = pnand %p282_p0, %p279_p13 }
 0x1a0   :  { %287 = shalt.err (!%p284_p1)
}
 0x1a1   :  { %211 = dma.vmem_to_hbm [thread:$0]  %s209_s9, 128, %s361_s3, [#allocation4]  }
 0x1a2   :  { %290 = dma.done.wait [#allocation4], 128  }
 0x1a3   :  { %291 = vsyncadd [#allocation4], 4294967168 }
 0x1a4   :  { %215 = vsyncpa [#allocation3], 1 }
 0x1a5   :  { %216 = vsyncpa [#allocation4], 1 }

</bundles_post_ra>
